<compile_context>
chip_gen: v6e
topology: v6e:2x2x1
jax: 0.10.0
libtpu: 0.0.40
codegen_flags: <defaults>
</compile_context>

<pallas_src>
import math
import functools

import jax
import jax.numpy as jnp
import numpy as np
from jax import lax
from jax.experimental import pallas as pl
from jax.experimental.pallas import tpu as pltpu

# ---------------- configuration ----------------
EMBED_DIM = 32
NUM_HEADS = 4
HEAD_DIM = EMBED_DIM // NUM_HEADS
BATCH = 2
SEQ = 8
LANE = 128  # TPU vreg lane width

_CONTRACT_LAST = (((1,), (1,)), ((), ()))  # contract last dim of both operands


# ---------------- Pallas kernel ----------------
def _mha_kernel(x_ref, wqkv_ref, b_in_ref, wo_ref, bo_ref, o_ref,
                *, num_heads: int, head_dim: int, embed_dim: int,
                lq: int, lk: int):
    """One batch element per grid step.

    Ref shapes (feature dim zero-padded to Ep = 128):
      x_ref    : (Lq + 2*Lk, Ep)  rows = [query ; key ; value] of this batch
      wqkv_ref : (128, Ep)        fused in-projection rows [Wq*scale ; Wk ; Wv ; 0-pad]
      b_in_ref : (1, 128)         fused in-projection bias [bq*scale | bk | bv | 0-pad]
      wo_ref   : (Ep, E)          out-projection (rows = output features, 0-padded)
      bo_ref   : (1, Ep)
      o_ref    : (Lq, Ep)         lane-dense output block
    """
    H, D, E = num_heads, head_dim, embed_dim
    f32 = jnp.float32

    x = x_ref[...].astype(f32)                                   # (Lq+2Lk, Ep)

    # One fused, lane-dense MXU push for q/k/v projections of every head.
    proj = lax.dot_general(x, wqkv_ref[...].astype(f32), _CONTRACT_LAST,
                           preferred_element_type=f32)           # (Lq+2Lk, 128)
    proj = proj + b_in_ref[...].astype(f32)                      # single broadcast add

    qp = proj[0:lq, :]                 # q rows (scale already folded into weights/bias)
    kp = proj[lq:lq + lk, :]
    vp = proj[lq + lk:lq + 2 * lk, :]

    head_out = []
    for h in range(H):                 # H static -> unrolled at trace time
        qh = qp[:, h * D:(h + 1) * D]                            # (Lq, D)
        kh = kp[:, E + h * D:E + (h + 1) * D]                    # (Lk, D)
        vh = vp[:, 2 * E + h * D:2 * E + (h + 1) * D]            # (Lk, D)

        # scores: contract head dim directly (no transpose)
        s = lax.dot_general(qh, kh, _CONTRACT_LAST,
                            preferred_element_type=f32)          # (Lq, Lk)

        # numerically-stable softmax, normalization deferred to the (Lq, D) output
        m = jnp.max(s, axis=-1, keepdims=True)
        p = jnp.exp(s - m)
        denom = jnp.sum(p, axis=-1, keepdims=True)
        oh = jnp.dot(p, vh, preferred_element_type=f32)          # (Lq, D) unnormalized
        # exact reciprocal keeps the tight f32 tolerance; approx=True routes to the
        # EUP slot and is safe-ish now that normalization only rescales rows of oh.
        oh = oh * pl.reciprocal(denom, approx=False)
        head_out.append(oh)

    o_cat = jnp.concatenate(head_out, axis=-1)                   # (Lq, E)

    # single fused out-projection; Ep-wide result -> unmasked lane-dense store
    out = lax.dot_general(o_cat, wo_ref[...].astype(f32), _CONTRACT_LAST,
                          preferred_element_type=f32)            # (Lq, Ep)
    o_ref[...] = (out + bo_ref[...].astype(f32)).astype(o_ref.dtype)


# ---------------- wrapper ----------------
def _pad_last(x, target):
    pad = target - x.shape[-1]
    if pad == 0:
        return x
    cfg = [(0, 0)] * (x.ndim - 1) + [(0, pad)]
    return jnp.pad(x, cfg)


def multi_head_attention(query, key, value,
                         in_proj_weight, in_proj_bias,
                         out_proj_weight, out_proj_bias,
                         num_heads=NUM_HEADS):
    """Pallas implementation of nn.MultiheadAttention(batch_first=True)(q, k, v)[0]."""
    B, Lq, E = query.shape
    Lk = key.shape[1]
    assert E % num_heads == 0
    H = num_heads
    D = E // H
    Ep = pl.cdiv(E, LANE) * LANE          # padded feature (lane) dim
    Rw = pl.cdiv(3 * E, LANE) * LANE      # padded fused-projection output dim
    scale = 1.0 / math.sqrt(D)

    # ---- trace-time layout prep (free at trace time, nothing sliced in-kernel at odd lanes) ----
    # fused input: rows = [q ; k ; v] per batch, feature dim zero-padded to Ep
    x = jnp.concatenate([_pad_last(query, Ep),
                         _pad_last(key, Ep),
                         _pad_last(value, Ep)], axis=1)           # (B, Lq+2Lk, Ep)

    # fused in-projection slab; 1/sqrt(D) folded into the q rows (exact)
    w_qkv = jnp.concatenate([in_proj_weight[0:E] * scale,
                             in_proj_weight[E:2 * E],
                             in_proj_weight[2 * E:3 * E]], axis=0)  # (3E, E)
    w_qkv = jnp.pad(w_qkv, ((0, Rw - 3 * E), (0, Ep - E)))          # (Rw, Ep)

    b_qkv = jnp.concatenate([in_proj_bias[0:E] * scale,
                             in_proj_bias[E:2 * E],
                             in_proj_bias[2 * E:3 * E]]).reshape(1, 3 * E)
    b_qkv = _pad_last(b_qkv, Rw)                                    # (1, Rw)

    w_o = jnp.pad(out_proj_weight, ((0, Ep - E), (0, 0)))           # (Ep, E)
    b_o = _pad_last(out_proj_bias.reshape(1, E), Ep)                # (1, Ep)

    kernel = functools.partial(_mha_kernel, num_heads=H, head_dim=D,
                               embed_dim=E, lq=Lq, lk=Lk)

    out_pad = pl.pallas_call(
        kernel,
        out_shape=jax.ShapeDtypeStruct((B, Lq, Ep), query.dtype),
        grid=(B,),
        in_specs=[
            pl.BlockSpec((None, Lq + 2 * Lk, Ep), lambda b: (b, 0, 0)),  # per-batch x
            pl.BlockSpec((Rw, Ep), lambda b: (0, 0)),                    # weights: resident
            pl.BlockSpec((1, Rw), lambda b: (0, 0)),
            pl.BlockSpec((Ep, E), lambda b: (0, 0)),
            pl.BlockSpec((1, Ep), lambda b: (0, 0)),
        ],
        out_specs=pl.BlockSpec((None, Lq, Ep), lambda b: (b, 0, 0)),
        compiler_params=pltpu.CompilerParams(
            dimension_semantics=("parallel",)),   # batch shards across v7x's 2 TCs
    )(x, w_qkv, b_qkv, w_o, b_o)

    return out_pad[:, :, :E]


# ---------------- pure-JAX reference (for verification) ----------------
def ref_mha(q, k, v, w_in, b_in, w_out, b_out, num_heads):
    B, Lq, E = q.shape
    Lk = k.shape[1]
    D = E // num_heads
    hi = lax.Precision.HIGHEST
    qp = jnp.einsum('ble,fe->blf', q, w_in[:E], precision=hi) + b_in[:E]
    kp = jnp.einsum('ble,fe->blf', k, w_in[E:2 * E], precision=hi) + b_in[E:2 * E]
    vp = jnp.einsum('ble,fe->blf', v, w_in[2 * E:], precision=hi) + b_in[2 * E:]
    qh = qp.reshape(B, Lq, num_heads, D).transpose(0, 2, 1, 3)
    kh = kp.reshape(B, Lk, num_heads, D).transpose(0, 2, 1, 3)
    vh = vp.reshape(B, Lk, num_heads, D).transpose(0, 2, 1, 3)
    s = jnp.einsum('bhld,bhsd->bhls', qh, kh, precision=hi) / math.sqrt(D)
    p = jax.nn.softmax(s, axis=-1)
    o = jnp.einsum('bhls,bhsd->bhld', p, vh, precision=hi)
    o = o.transpose(0, 2, 1, 3).reshape(B, Lq, E)
    return jnp.einsum('ble,fe->blf', o, w_out, precision=hi) + b_out


if __name__ == "__main__":
    key0 = jax.random.PRNGKey(0)
    k_q, k_k, k_v, k_win, k_bin, k_wout, k_bout = jax.random.split(key0, 7)

    # deterministic synthetic parameters (shapes from nn.MultiheadAttention.__init__)
    bound_in = 1.0 / math.sqrt(EMBED_DIM)
    in_proj_weight = jax.random.uniform(k_win, (3 * EMBED_DIM, EMBED_DIM),
                                        minval=-bound_in, maxval=bound_in, dtype=jnp.float32)
    in_proj_bias = jax.random.uniform(k_bin, (3 * EMBED_DIM,),
                                      minval=-bound_in, maxval=bound_in, dtype=jnp.float32)
    out_proj_weight = jax.random.uniform(k_wout, (EMBED_DIM, EMBED_DIM),
                                         minval=-bound_in, maxval=bound_in, dtype=jnp.float32)
    out_proj_bias = jax.random.uniform(k_bout, (EMBED_DIM,),
                                       minval=-bound_in, maxval=bound_in, dtype=jnp.float32)

    # inputs: (B, L, E), batch_first=True
    query = jax.random.normal(k_q, (BATCH, SEQ, EMBED_DIM), dtype=jnp.float32)
    key = jax.random.normal(k_k, (BATCH, SEQ, EMBED_DIM), dtype=jnp.float32)
    value = jax.random.normal(k_v, (BATCH, SEQ, EMBED_DIM), dtype=jnp.float32)

    out = multi_head_attention(query, key, value, in_proj_weight, in_proj_bias,
                               out_proj_weight, out_proj_bias, num_heads=NUM_HEADS)
    out = jax.block_until_ready(out)

    ref = ref_mha(query, key, value, in_proj_weight, in_proj_bias,
                  out_proj_weight, out_proj_bias, NUM_HEADS)
    np.testing.assert_allclose(np.asarray(out), np.asarray(ref), rtol=2e-4, atol=2e-5)

    print("KERNEL_OK")
</pallas_src>

<mosaic_0001>
module attributes {stable_mosaic.version = 11 : i64} {
  func.func @_mha_kernel(%arg0: i32, %arg1: memref<1x24x128xf32, #tpu.memory_space<vmem>>, %arg2: memref<128x128xf32, #tpu.memory_space<vmem>>, %arg3: memref<1x128xf32, #tpu.memory_space<vmem>>, %arg4: memref<128x32xf32, #tpu.memory_space<vmem>>, %arg5: memref<1x128xf32, #tpu.memory_space<vmem>>, %arg6: memref<1x8x128xf32, #tpu.memory_space<vmem>>) attributes {dimension_semantics = [#tpu.dimension_semantics<parallel>], iteration_bounds = array<i64: 2>, scalar_prefetch = 0 : i64, scratch_operands = 0 : i64, tpu.core_type = #tpu.core_type<tc>, window_params = [{transform_indices = @transform_0, window_bounds = array<i64: 1, 24, 128>}, {pipeline_mode = #tpu.pipeline_mode<synchronous>, transform_indices = @transform_1, window_bounds = array<i64: 128, 128>}, {pipeline_mode = #tpu.pipeline_mode<synchronous>, transform_indices = @transform_2, window_bounds = array<i64: 1, 128>}, {pipeline_mode = #tpu.pipeline_mode<synchronous>, transform_indices = @transform_3, window_bounds = array<i64: 128, 32>}, {pipeline_mode = #tpu.pipeline_mode<synchronous>, transform_indices = @transform_4, window_bounds = array<i64: 1, 128>}, {transform_indices = @transform_5, window_bounds = array<i64: 1, 8, 128>}]} {
    %c0 = arith.constant 0 : index
    %c0_0 = arith.constant 0 : index
    %c0_1 = arith.constant 0 : index
    %0 = vector.load %arg1[%c0, %c0_0, %c0_1] : memref<1x24x128xf32, #tpu.memory_space<vmem>>, vector<1x24x128xf32>
    %1 = vector.shape_cast %0 : vector<1x24x128xf32> to vector<24x128xf32>
    %c0_2 = arith.constant 0 : index
    %c0_3 = arith.constant 0 : index
    %2 = vector.load %arg2[%c0_2, %c0_3] : memref<128x128xf32, #tpu.memory_space<vmem>>, vector<128x128xf32>
    %cst = arith.constant dense<0.000000e+00> : vector<24x128xf32>
    %3 = tpu.matmul %1, %2, %cst {dimension_numbers = #tpu.dot_dimension_numbers<[1], [1], [0], [0], [0, 0, 1, 0], [], []>} : vector<24x128xf32>, vector<128x128xf32>, vector<24x128xf32> -> vector<24x128xf32>
    %c0_4 = arith.constant 0 : index
    %c0_5 = arith.constant 0 : index
    %4 = vector.load %arg3[%c0_4, %c0_5] : memref<1x128xf32, #tpu.memory_space<vmem>>, vector<1x128xf32>
    %5 = vector.broadcast %4 : vector<1x128xf32> to vector<24x128xf32>
    %6 = arith.addf %3, %5 : vector<24x128xf32>
    %7 = vector.extract_strided_slice %6 {offsets = [0, 0], sizes = [8, 128], strides = [1, 1]} : vector<24x128xf32> to vector<8x128xf32>
    %8 = vector.extract_strided_slice %6 {offsets = [8, 0], sizes = [8, 128], strides = [1, 1]} : vector<24x128xf32> to vector<8x128xf32>
    %9 = vector.extract_strided_slice %6 {offsets = [16, 0], sizes = [8, 128], strides = [1, 1]} : vector<24x128xf32> to vector<8x128xf32>
    %10 = vector.extract_strided_slice %7 {offsets = [0, 0], sizes = [8, 8], strides = [1, 1]} : vector<8x128xf32> to vector<8x8xf32>
    %11 = vector.extract_strided_slice %8 {offsets = [0, 32], sizes = [8, 8], strides = [1, 1]} : vector<8x128xf32> to vector<8x8xf32>
    %12 = vector.extract_strided_slice %9 {offsets = [0, 64], sizes = [8, 8], strides = [1, 1]} : vector<8x128xf32> to vector<8x8xf32>
    %cst_6 = arith.constant dense<0.000000e+00> : vector<8x8xf32>
    %13 = tpu.matmul %10, %11, %cst_6 {dimension_numbers = #tpu.dot_dimension_numbers<[1], [1], [0], [0], [0, 0, 1, 0], [], []>} : vector<8x8xf32>, vector<8x8xf32>, vector<8x8xf32> -> vector<8x8xf32>
    %cst_7 = arith.constant dense<0xFF800000> : vector<8xf32>
    %14 = vector.multi_reduction <maximumf>, %13, %cst_7 [1] : vector<8x8xf32> to vector<8xf32>
    %15 = vector.shape_cast %14 : vector<8xf32> to vector<8x1xf32>
    %16 = vector.broadcast %15 : vector<8x1xf32> to vector<8x8xf32>
    %17 = arith.subf %13, %16 : vector<8x8xf32>
    %18 = math.exp %17 : vector<8x8xf32>
    %cst_8 = arith.constant dense<0.000000e+00> : vector<8xf32>
    %19 = vector.multi_reduction <add>, %18, %cst_8 [1] : vector<8x8xf32> to vector<8xf32>
    %20 = vector.shape_cast %19 : vector<8xf32> to vector<8x1xf32>
    %cst_9 = arith.constant dense<0.000000e+00> : vector<8x8xf32>
    %21 = tpu.matmul %18, %12, %cst_9 {dimension_numbers = #tpu.dot_dimension_numbers<[1], [0], [0], [1], [0, 0, 1, 1], [], []>} : vector<8x8xf32>, vector<8x8xf32>, vector<8x8xf32> -> vector<8x8xf32>
    %22 = tpu.reciprocal %20 : vector<8x1xf32> -> vector<8x1xf32>
    %23 = vector.broadcast %22 : vector<8x1xf32> to vector<8x8xf32>
    %24 = arith.mulf %21, %23 : vector<8x8xf32>
    %25 = vector.extract_strided_slice %7 {offsets = [0, 8], sizes = [8, 8], strides = [1, 1]} : vector<8x128xf32> to vector<8x8xf32>
    %26 = vector.extract_strided_slice %8 {offsets = [0, 40], sizes = [8, 8], strides = [1, 1]} : vector<8x128xf32> to vector<8x8xf32>
    %27 = vector.extract_strided_slice %9 {offsets = [0, 72], sizes = [8, 8], strides = [1, 1]} : vector<8x128xf32> to vector<8x8xf32>
    %cst_10 = arith.constant dense<0.000000e+00> : vector<8x8xf32>
    %28 = tpu.matmul %25, %26, %cst_10 {dimension_numbers = #tpu.dot_dimension_numbers<[1], [1], [0], [0], [0, 0, 1, 0], [], []>} : vector<8x8xf32>, vector<8x8xf32>, vector<8x8xf32> -> vector<8x8xf32>
    %cst_11 = arith.constant dense<0xFF800000> : vector<8xf32>
    %29 = vector.multi_reduction <maximumf>, %28, %cst_11 [1] : vector<8x8xf32> to vector<8xf32>
    %30 = vector.shape_cast %29 : vector<8xf32> to vector<8x1xf32>
    %31 = vector.broadcast %30 : vector<8x1xf32> to vector<8x8xf32>
    %32 = arith.subf %28, %31 : vector<8x8xf32>
    %33 = math.exp %32 : vector<8x8xf32>
    %cst_12 = arith.constant dense<0.000000e+00> : vector<8xf32>
    %34 = vector.multi_reduction <add>, %33, %cst_12 [1] : vector<8x8xf32> to vector<8xf32>
    %35 = vector.shape_cast %34 : vector<8xf32> to vector<8x1xf32>
    %cst_13 = arith.constant dense<0.000000e+00> : vector<8x8xf32>
    %36 = tpu.matmul %33, %27, %cst_13 {dimension_numbers = #tpu.dot_dimension_numbers<[1], [0], [0], [1], [0, 0, 1, 1], [], []>} : vector<8x8xf32>, vector<8x8xf32>, vector<8x8xf32> -> vector<8x8xf32>
    %37 = tpu.reciprocal %35 : vector<8x1xf32> -> vector<8x1xf32>
    %38 = vector.broadcast %37 : vector<8x1xf32> to vector<8x8xf32>
    %39 = arith.mulf %36, %38 : vector<8x8xf32>
    %40 = vector.extract_strided_slice %7 {offsets = [0, 16], sizes = [8, 8], strides = [1, 1]} : vector<8x128xf32> to vector<8x8xf32>
    %41 = vector.extract_strided_slice %8 {offsets = [0, 48], sizes = [8, 8], strides = [1, 1]} : vector<8x128xf32> to vector<8x8xf32>
    %42 = vector.extract_strided_slice %9 {offsets = [0, 80], sizes = [8, 8], strides = [1, 1]} : vector<8x128xf32> to vector<8x8xf32>
    %cst_14 = arith.constant dense<0.000000e+00> : vector<8x8xf32>
    %43 = tpu.matmul %40, %41, %cst_14 {dimension_numbers = #tpu.dot_dimension_numbers<[1], [1], [0], [0], [0, 0, 1, 0], [], []>} : vector<8x8xf32>, vector<8x8xf32>, vector<8x8xf32> -> vector<8x8xf32>
    %cst_15 = arith.constant dense<0xFF800000> : vector<8xf32>
    %44 = vector.multi_reduction <maximumf>, %43, %cst_15 [1] : vector<8x8xf32> to vector<8xf32>
    %45 = vector.shape_cast %44 : vector<8xf32> to vector<8x1xf32>
    %46 = vector.broadcast %45 : vector<8x1xf32> to vector<8x8xf32>
    %47 = arith.subf %43, %46 : vector<8x8xf32>
    %48 = math.exp %47 : vector<8x8xf32>
    %cst_16 = arith.constant dense<0.000000e+00> : vector<8xf32>
    %49 = vector.multi_reduction <add>, %48, %cst_16 [1] : vector<8x8xf32> to vector<8xf32>
    %50 = vector.shape_cast %49 : vector<8xf32> to vector<8x1xf32>
    %cst_17 = arith.constant dense<0.000000e+00> : vector<8x8xf32>
    %51 = tpu.matmul %48, %42, %cst_17 {dimension_numbers = #tpu.dot_dimension_numbers<[1], [0], [0], [1], [0, 0, 1, 1], [], []>} : vector<8x8xf32>, vector<8x8xf32>, vector<8x8xf32> -> vector<8x8xf32>
    %52 = tpu.reciprocal %50 : vector<8x1xf32> -> vector<8x1xf32>
    %53 = vector.broadcast %52 : vector<8x1xf32> to vector<8x8xf32>
    %54 = arith.mulf %51, %53 : vector<8x8xf32>
    %55 = vector.extract_strided_slice %7 {offsets = [0, 24], sizes = [8, 8], strides = [1, 1]} : vector<8x128xf32> to vector<8x8xf32>
    %56 = vector.extract_strided_slice %8 {offsets = [0, 56], sizes = [8, 8], strides = [1, 1]} : vector<8x128xf32> to vector<8x8xf32>
    %57 = vector.extract_strided_slice %9 {offsets = [0, 88], sizes = [8, 8], strides = [1, 1]} : vector<8x128xf32> to vector<8x8xf32>
    %cst_18 = arith.constant dense<0.000000e+00> : vector<8x8xf32>
    %58 = tpu.matmul %55, %56, %cst_18 {dimension_numbers = #tpu.dot_dimension_numbers<[1], [1], [0], [0], [0, 0, 1, 0], [], []>} : vector<8x8xf32>, vector<8x8xf32>, vector<8x8xf32> -> vector<8x8xf32>
    %cst_19 = arith.constant dense<0xFF800000> : vector<8xf32>
    %59 = vector.multi_reduction <maximumf>, %58, %cst_19 [1] : vector<8x8xf32> to vector<8xf32>
    %60 = vector.shape_cast %59 : vector<8xf32> to vector<8x1xf32>
    %61 = vector.broadcast %60 : vector<8x1xf32> to vector<8x8xf32>
    %62 = arith.subf %58, %61 : vector<8x8xf32>
    %63 = math.exp %62 : vector<8x8xf32>
    %cst_20 = arith.constant dense<0.000000e+00> : vector<8xf32>
    %64 = vector.multi_reduction <add>, %63, %cst_20 [1] : vector<8x8xf32> to vector<8xf32>
    %65 = vector.shape_cast %64 : vector<8xf32> to vector<8x1xf32>
    %cst_21 = arith.constant dense<0.000000e+00> : vector<8x8xf32>
    %66 = tpu.matmul %63, %57, %cst_21 {dimension_numbers = #tpu.dot_dimension_numbers<[1], [0], [0], [1], [0, 0, 1, 1], [], []>} : vector<8x8xf32>, vector<8x8xf32>, vector<8x8xf32> -> vector<8x8xf32>
    %67 = tpu.reciprocal %65 : vector<8x1xf32> -> vector<8x1xf32>
    %68 = vector.broadcast %67 : vector<8x1xf32> to vector<8x8xf32>
    %69 = arith.mulf %66, %68 : vector<8x8xf32>
    %70 = tpu.concatenate %24, %39, %54, %69 in 1 : vector<8x8xf32>, vector<8x8xf32>, vector<8x8xf32>, vector<8x8xf32> -> vector<8x32xf32>
    %c0_22 = arith.constant 0 : index
    %c0_23 = arith.constant 0 : index
    %71 = vector.load %arg4[%c0_22, %c0_23] : memref<128x32xf32, #tpu.memory_space<vmem>>, vector<128x32xf32>
    %cst_24 = arith.constant dense<0.000000e+00> : vector<8x128xf32>
    %72 = tpu.matmul %70, %71, %cst_24 {dimension_numbers = #tpu.dot_dimension_numbers<[1], [1], [0], [0], [0, 0, 1, 0], [], []>} : vector<8x32xf32>, vector<128x32xf32>, vector<8x128xf32> -> vector<8x128xf32>
    %c0_25 = arith.constant 0 : index
    %c0_26 = arith.constant 0 : index
    %73 = vector.load %arg5[%c0_25, %c0_26] : memref<1x128xf32, #tpu.memory_space<vmem>>, vector<1x128xf32>
    %74 = vector.broadcast %73 : vector<1x128xf32> to vector<8x128xf32>
    %75 = arith.addf %72, %74 : vector<8x128xf32>
    %c0_27 = arith.constant 0 : index
    %c0_28 = arith.constant 0 : index
    %c0_29 = arith.constant 0 : index
    %76 = vector.load %arg6[%c0_27, %c0_28, %c0_29] : memref<1x8x128xf32, #tpu.memory_space<vmem>>, vector<1x8x128xf32>
    %77 = vector.shape_cast %76 : vector<1x8x128xf32> to vector<8x128xf32>
    %78 = vector.shape_cast %75 : vector<8x128xf32> to vector<1x8x128xf32>
    tpu.vector_store %arg6[%c0_27, %c0_28, %c0_29], %78 {strides = array<i32>} : memref<1x8x128xf32, #tpu.memory_space<vmem>>, vector<1x8x128xf32>,
    return
  }
  func.func @transform_0(%arg0: i32) -> (i32, i32, i32) {
    %c0_i32 = arith.constant 0 : i32
    %c0_i32_0 = arith.constant 0 : i32
    %c0_i32_1 = arith.constant 0 : i32
    return %arg0, %c0_i32, %c0_i32_0 : i32, i32, i32
  }
  func.func @transform_1(%arg0: i32) -> (i32, i32) {
    %c0_i32 = arith.constant 0 : i32
    %c0_i32_0 = arith.constant 0 : i32
    %c0_i32_1 = arith.constant 0 : i32
    return %c0_i32, %c0_i32_0 : i32, i32
  }
  func.func @transform_2(%arg0: i32) -> (i32, i32) {
    %c0_i32 = arith.constant 0 : i32
    %c0_i32_0 = arith.constant 0 : i32
    %c0_i32_1 = arith.constant 0 : i32
    return %c0_i32, %c0_i32_0 : i32, i32
  }
  func.func @transform_3(%arg0: i32) -> (i32, i32) {
    %c0_i32 = arith.constant 0 : i32
    %c0_i32_0 = arith.constant 0 : i32
    %c0_i32_1 = arith.constant 0 : i32
    return %c0_i32, %c0_i32_0 : i32, i32
  }
  func.func @transform_4(%arg0: i32) -> (i32, i32) {
    %c0_i32 = arith.constant 0 : i32
    %c0_i32_0 = arith.constant 0 : i32
    %c0_i32_1 = arith.constant 0 : i32
    return %c0_i32, %c0_i32_0 : i32, i32
  }
  func.func @transform_5(%arg0: i32) -> (i32, i32, i32) {
    %c0_i32 = arith.constant 0 : i32
    %c0_i32_0 = arith.constant 0 : i32
    %c0_i32_1 = arith.constant 0 : i32
    return %arg0, %c0_i32, %c0_i32_0 : i32, i32, i32
  }
}

</mosaic_0001>

<bundles_post_ra>
// kernel: tpu_custom_call.1
= control target key start
LH: loop header
LB: loop body
LE: loop exit
PB: predicated region body
PF: predicated region fallthrough
CT: control target
= control target key end

     0   :  { %10 = vsyncpa [#allocation3], 0  ;;  %s2057_s0 = inlined_call_operand.hbm [shape: f32[2,24,128], index: 0, kind: input, shape index: {}]   ;;  %s2058_s1 = inlined_call_operand.vmem [shape: f32[128,128], index: 1, kind: input, shape index: {}]   ;;  %s2059_s2 = inlined_call_operand.vmem [shape: f32[1,128], index: 2, kind: input, shape index: {}]   ;;  %s2060_s3 = inlined_call_operand.vmem [shape: f32[128,32], index: 3, kind: input, shape index: {}]   ;;  %s2061_s4 = inlined_call_operand.vmem [shape: f32[1,128], index: 4, kind: input, shape index: {}]   ;;  %s2062_s5 = inlined_call_operand.hbm [shape: f32[2,8,128], index: 5, kind: output, shape index: {}]  }
   0x1   :  { %12 = vsyncpa [#allocation3 + $0x1], 0 }
   0x2   :  { %13 = vsyncpa [#allocation4], 0 }
   0x3   :  { %15 = vsyncpa [#allocation4 + $0x1], 0  ;;  %s1694_s18 = smov 0   ;;  %s1696_s19 = smov 0  }
   0x4   :  { %s1698_s20 = smov 0   ;;  %s1700_s21 = smov 0  }
   0x5 LB: > { %s1715_s22 = sadd.s32 4294967295, %s1642_s21   ;;  %s1258_s23 = sadd.s32 4294967294, %s1642_s21   ;;  %s1642_s21 = sphi %s1700_s21, %s2076_s21   ;;  %s1638_s20 = sphi %s1698_s20, %s2075_s20   ;;  %s1634_s19 = sphi %s1696_s19, %s2074_s19   ;;  %s1630_s18 = sphi %s1694_s18, %s2073_s18  }
   0x6   : > { %s1719_s24 = sadd.s32 1, %s1642_s21   ;;  %s28_s25 = sadd.s32 1, %s1638_s20 }
   0x7   : > { %s25_s26 = ssub.s32 %s1642_s21, %s1719_s24  ;;  %p35_p0 = scmp.ne.s32.totalorder %s1638_s20, %s1634_s19 }
   0x8   : > { %p26_p1 = scmp.eq.s32.totalorder %s25_s26, 0  ;;  %p36_p2 = scmp.eq.s32.totalorder %s1642_s21, 0 }
   0x9   : > { %p41_p3 = scmp.ne.s32.totalorder %s1634_s19, %s1630_s18  ;;  %p42_p4 = scmp.eq.s32.totalorder %s1715_s22, 0 }
   0xa   : > { %s1731_s27 = scalar_select %p26_p1, %s1638_s20, %s28_s25  }
   0xb   : > { %p37_p5 = por %p36_p2, %p35_p0  ;;  %p1733_p6 = por %p42_p4, %p41_p3 }
   0xc   : > { %p149_p7 = scmp.eq.s32.totalorder %s1715_s22, 1  ;;  %p155_p8 = scmp.eq.s32.totalorder %s1258_s23, 1 }
   0xd   : > { %s2065_s28 = scalar_select %p1733_p6, 1, 0 }
   0xe   : > { %p1482_p10 = scmp.lt.s32.totalorder %s1642_s21, 2  ;;  %p1740_p11 = por %p149_p7, %p35_p0 }
   0xf   : > { %p1744_p12 = por %p155_p8, %p41_p3  ;;  %s187_s6 = sand.u32 1, %s1638_s20  }
  0x10   : > { %s2066_s29 = scalar_select %p1740_p11, 1, 0 }
  0x11   : > { %s2067_s30 = scalar_select %p1744_p12, 1, 0 }
  0x12   : > { %s1468_s7 = smul.u32 384, %s1642_s21  ;;  %p1755_p13 = pnand %p1482_p10, %p37_p5 }
  0x13   : > { %s1467_s8 = smul.u32 24, %s187_s6  ;;  %s1761_s15 = scalar_lea.sflag [#allocation3], %s187_s6 }
  0x14   : > { %s1753_s11 = scalar_lea.hbm %s2057_s0, %s1468_s7  ;;  %p1552_p1 = pneg %p1755_p13 }
  0x15   : > { %s191_s13 = scalar_lea.vmem [#allocation2], %s1467_s8  ;;  %s1550_s16 = scalar_lea.hbm %s1753_s11, 384 }
  0x16   : > { %s198_s14 = sshll.u32 %s191_s13, 4  ;;  %p1551_p0 = scmp.ne.s32.totalorder %s1753_s11, %s1550_s16  ;;  %s1759_s14 = int_to_ptr.vmem [resolvable:$true] %s198_s14 }
  0x17   : > { %s1555_s25 = scalar_lea.hbm %s2057_s0, 768  ;;  %p1556_p4 = scmp.lt.s32.totalorder %s1753_s11, %s2057_s0 }
  0x18   : > { %p1553_p2 = pnand %p1552_p1, %p1551_p0  ;;  %p1557_p5 = scmp.lt.s32.totalorder %s1555_s25, %s1550_s16 }
  0x1a   : > { %p1554_p3 = pneg %p1553_p2  ;;  %p1558_p7 = por %p1557_p5, %p1556_p4 }
  0x1c   : > { %p1559_p8 = pnand %p1558_p7, %p1554_p3 }
  0x1e   : > { %1562 = shalt.err (!%p1559_p8)
}
  0x1f   : > { %s1563_s6 = scalar_lea.vmem %s1759_s14, 384  ;;  %s1644_s8 = smov [#allocation2]  }
  0x20   : > { %p1564_p10 = scmp.ne.s32.totalorder %s1759_s14, %s1563_s6  ;;  %s1568_s9 = sshll.u32 %s1644_s8, 4  ;;  %s1569_s9 = int_to_ptr.vmem [resolvable:$false] %s1568_s9 }
  0x21   : > { %s1570_s10 = scalar_lea.vmem %s1569_s9, 768  ;;  %p1571_p2 = scmp.lt.s32.totalorder %s1759_s14, %s1569_s9 }
  0x22   : > { %p1566_p9 = pnand %p1564_p10, %p1552_p1  ;;  %p1572_p12 = scmp.lt.s32.totalorder %s1570_s10, %s1563_s6 }
  0x24   : > { %p1567_p0 = pneg %p1566_p9  ;;  %p1573_p11 = por %p1572_p12, %p1571_p2 }
  0x26   : > { %p1574_p6 = pnand %p1573_p11, %p1567_p0 }
  0x28   : > { %1577 = shalt.err (!%p1574_p6)
}
  0x29   : > { %s1645_s13 = smov 128   ;;  %s1646_s16 = smov 8  }
  0x2a   : > { %1477 = dma.hbm_to_vmem [thread:$0]  (!%p1755_p13), %s1753_s11, 384, %s1759_s14, %s1761_s15, %s1645_s13, %s1645_s13, %s1646_s16  }
  0x2b   : > { %p1262_p9 = scmp.ge.s32.totalorder %s1642_s21, 1  ;;  %p206_p1 = scmp.lt.s32.totalorder %s1642_s21, 3 }
  0x2d   : > { %p207_p3 = pnand %p1262_p9, %p206_p1 }
  0x2e   : > { %s1785_s17 = sand.u32 (!%p207_p3), 1, %s1634_s19   ;;  %p2069_p6 = scmp.ne.s32.totalorder (!%p207_p3), %s2065_s28, 0 }
  0x2f   : > { %210 = sbr.rel (%p207_p3) target bundleno = 2367 (0x93f), region = 40  ;;  %s213_s25 = scalar_lea.sflag (!%p207_p3), [#allocation3], %s1785_s17 }
  0x30   : > { %s1469_s23 = smul.u32 (!%p207_p3), 24, %s1785_s17 }
  0x32   : > { %s1789_s26 = scalar_lea.vmem (!%p207_p3), [#allocation2], %s1469_s23 }
  0x34   : > { %1621 = dma.done.wait (%p2069_p6), %s213_s25, 384  }
  0x35   : > { %1623 = vsyncadd (%p2069_p6), %s213_s25, 4294966912  ;;  %v1647_v0 = vmov 0.0   ;;  %vm1648_vm0 = vmmov 0   ;;  %v261_v1 = vld [vmem:[%s2058_s1 + $0x78] sm:$0xff]  ;;  %v260_v2 = vld [vmem:[%s2058_s1 + $0x70] sm:$0xff]  ;;  %s1649_s6 = smov 96  }
  0x36   : > { %1351 = vmatprep.subr.mxu0 %v1647_v0  ;;  %1383 = vmatprep.mubr.msk.f32.mxu0 %vm1648_vm0, %v1647_v0  ;;  %v259_v3 = vld [vmem:[%s2058_s1 + $0x68] sm:$0xff]  ;;  %v258_v4 = vld [vmem:[%s2058_s1 + $0x60] sm:$0xff]  ;;  %v257_v5 = vld [vmem:[%s2058_s1 + $0x58] sm:$0xff]  ;;  %s1651_s8 = smov 88   ;;  %s1652_s9 = smov 120   ;;  %vm352_vm1 = vcmask 64512  }
  0x37   : > { %1407 = vmatprep.subr.mxu1 %v1647_v0  ;;  %1409 = vmatprep.mubr.msk.f32.mxu1 %vm1648_vm0, %v1647_v0  ;;  %v256_v6 = vld [vmem:[%s2058_s1 + $0x50] sm:$0xff]  ;;  %v255_v7 = vld [vmem:[%s2058_s1 + $0x48] sm:$0xff]  ;;  %v254_v8 = vld [vmem:[%s2058_s1 + $0x40] sm:$0xff]  ;;  %s1653_s10 = smov 56   ;;  %s1654_s13 = smov 112   ;;  %vm1051_vm2 = vcmask 261120  }
  0x38   : > { %1352 = vmatpush3.xpose.msra.mxu0 %v261_v1  ;;  %v253_v9 = vld [vmem:[%s2058_s1 + $0x38] sm:$0xff]  ;;  %v252_v10 = vld [vmem:[%s2058_s1 + $0x30] sm:$0xff]  ;;  %v251_v11 = vld [vmem:[%s2058_s1 + $0x28] sm:$0xff]  ;;  %s1655_s16 = smov 80   ;;  %s1656_s23 = smov 48   ;;  %vm1024_vm3 = vcmask 130048  }
  0x39   : > { %1353 = vmatprep.subr.mxu0 %v1647_v0  ;;  %v250_v12 = vld [vmem:[%s2058_s1 + $0x20] sm:$0xff]  ;;  %v249_v13 = vld [vmem:[%s2058_s1 + $0x18] sm:$0xff]  ;;  %v248_v14 = vld [vmem:[%s2058_s1 + $0x10] sm:$0xff]  ;;  %s1657_s25 = smov 72   ;;  %s1658_s11 = smov 104   ;;  %vm1026_vm4 = vcmask 195584  }
  0x3a   : > { %v247_v15 = vld [vmem:[%s2058_s1 + $0x8] sm:$0xff]  ;;  %v246_v16 = vld [vmem:[%s2058_s1] sm:$0xff]  ;;  %s1659_s12 = smov 40   ;;  %s1660_s28 = smov 8  }
  0x3b   : > { %v243_v17 = vld [vmem:[%s1789_s26] sm:$0xff]  ;;  %v244_v18 = vld [vmem:[%s1789_s26 + $0x8] sm:$0xff]  ;;  %v245_v19 = vld [vmem:[%s1789_s26 + $0x10] sm:$0xff]  ;;  %s1650_s26 = smov 64   ;;  %s1661_s14 = smov 16  }
  0x3c   : > { %1354 = vmatpush3.xpose.msra.mxu0 %v260_v2  ;;  %v1264_v22 = vld [vmem:[%s2059_s2] ss:$0 sm:$0xff]  ;;  %p2070_p12 = scmp.ne.s32.totalorder %s2066_s29, 0 }
  0x3d   : > { %1355 = vmatprep.subr.mxu0 %v1647_v0 }
  0x40   : > { %1356 = vmatpush3.xpose.msra.mxu0 %v259_v3 }
  0x41   : > { %1357 = vmatprep.subr.mxu0 %v1647_v0 }
  0x44   : > { %1358 = vmatpush3.xpose.msra.mxu0 %v258_v4 }
  0x45   : > { %1359 = vmatprep.subr.mxu0 %v1647_v0 }
  0x48   : > { %1360 = vmatpush3.xpose.msra.mxu0 %v257_v5 }
  0x49   : > { %1361 = vmatprep.subr.mxu0 %v1647_v0 }
  0x4c   : > { %1362 = vmatpush3.xpose.msra.mxu0 %v256_v6 }
  0x4d   : > { %1363 = vmatprep.subr.mxu0 %v1647_v0 }
  0x50   : > { %1364 = vmatpush3.xpose.msra.mxu0 %v255_v7 }
  0x51   : > { %1365 = vmatprep.subr.mxu0 %v1647_v0 }
  0x54   : > { %1366 = vmatpush3.xpose.msra.mxu0 %v254_v8 }
  0x55   : > { %1367 = vmatprep.subr.mxu0 %v1647_v0 }
  0x58   : > { %1368 = vmatpush3.xpose.msra.mxu0 %v253_v9 }
  0x59   : > { %1369 = vmatprep.subr.mxu0 %v1647_v0 }
  0x5c   : > { %1370 = vmatpush3.xpose.msra.mxu0 %v252_v10 }
  0x5d   : > { %1371 = vmatprep.subr.mxu0 %v1647_v0 }
  0x60   : > { %1372 = vmatpush3.xpose.msra.mxu0 %v251_v11 }
  0x61   : > { %1373 = vmatprep.subr.mxu0 %v1647_v0 }
  0x64   : > { %1374 = vmatpush3.xpose.msra.mxu0 %v250_v12 }
  0x65   : > { %1375 = vmatprep.subr.mxu0 %v1647_v0 }
  0x68   : > { %1376 = vmatpush3.xpose.msra.mxu0 %v249_v13 }
  0x69   : > { %1377 = vmatprep.subr.mxu0 %v1647_v0 }
  0x6c   : > { %1378 = vmatpush3.xpose.msra.mxu0 %v248_v14 }
  0x6d   : > { %1379 = vmatprep.subr.mxu0 %v1647_v0 }
  0x70   : > { %1380 = vmatpush3.xpose.msra.mxu0 %v247_v15 }
  0x71   : > { %1381 = vmatprep.subr.mxu0 %v1647_v0 }
  0x74   : > { %1382 = vmatpush3.xpose.msra.mxu0 %v246_v16 }
  0x75   : > { %1392 = vmatprep.subr.mxu0 %v1647_v0 }
  0x77   : > { %1384 = vmatmul.mubr.f32.vlgmr.msra.gmra.mxu0 %v243_v17 }
  0x78   : > { %1386 = vmatprep.mubr.msk.f32.mxu0 %vm1648_vm0, %v1647_v0 }
  0x7b   : > { %1387 = vmatmul.mubr.f32.gmra.mxu0 %v244_v18 }
  0x7c   : > { %1389 = vmatprep.mubr.msk.f32.mxu0 %vm1648_vm0, %v1647_v0 }
  0x7f   : > { %1390 = vmatmul.mubr.f32.gmra.mxu0 %v245_v19 }
  0x80   : > { %1394 = vmatprep.mubr.msk.f32.mxu0 %vm1648_vm0, %v1647_v0 }
 0x137   : > { %v335_v20 = vpop.f32.mrf.mxu0 }
 0x138   : > { %v336_v29 = vadd.f32 %v1264_v22, %v335_v20 }
 0x139   : > { %v1385_v21 = vpop.f32.mrf.mxu0 }
 0x13b   : > { %v340_v23 = vpop.f32.mrf.mxu0 }
 0x13c   : > { %v341_v24 = vadd.f32 %v1264_v22, %v340_v23  ;;  %v1042_v23 = vld [vmem:[%s2060_s3 + $0x70] sm:$0xff] }
 0x13d   : > { %v1388_v25 = vpop.f32.mrf.mxu0 }
 0x13e   : > { %350 = vrot.lane.b32.xlu0 %v341_v24, %s1649_s6  ;;  %v1040_v25 = vld [vmem:[%s2060_s3 + $0x60] sm:$0xff]  ;;  %s1662_s6 = smov 24  }
 0x13f   : > { %v345_v26 = vpop.f32.mrf.mxu0 }
 0x140   : > { %v1877_v27 = vadd.f32 %v1264_v22, %v345_v26  ;;  %v1043_v22 = vld [vmem:[%s2060_s3 + $0x78] sm:$0xff] }
 0x141   : > { %v1391_v28 = vpop.f32.mrf.mxu0  ;;  %v1039_v26 = vld [vmem:[%s2060_s3 + $0x58] sm:$0xff] }
 0x142   : > { %438 = vrot.lane.b32.xlu1 %v1877_v27, %s1650_s26  ;;  %v1037_v28 = vld [vmem:[%s2060_s3 + $0x48] sm:$0xff]  ;;  %s1263_s26 = sshll.u32 %s1785_s17, 3 }
 0x146   : > { %518 = vrot.lane.b32.xlu1 %v341_v24, %s1651_s8 }
 0x14a   : > { %516 = vrot.lane.b32.xlu1 %v336_v29, %s1652_s9 }
 0x1b0   : > { %v351_v30 = vpop.permute.xlu0 %350 }
 0x1b1   : > { %1393 = vmatpush3.xpose.msk.msra.mxu0 %vm352_vm1, %v351_v30  ;;  %v1035_v30 = vld [vmem:[%s2060_s3 + $0x38] sm:$0xff] }
 0x1b2   : > { %1397 = vmatprep.subr.mxu0 %v1647_v0 }
 0x1b4   : > { %1395 = vmatmul.mubr.msk.f32.vlgmr.msra.gmra.mxu0 %vm352_vm1, %v336_v29  ;;  %v439_v31 = vpop.permute.xlu1 %438 }
 0x1b5   : > { %1398 = vmatpush3.msra.mxu0 %v439_v31  ;;  %1399 = vmatprep.mubr.msk.f32.mxu0 %vm1648_vm0, %v1647_v0  ;;  %v1034_v31 = vld [vmem:[%s2060_s3 + $0x30] sm:$0xff] }
 0x1b6   : > { %1402 = vmatprep.subr.mxu0 %v1647_v0 }
 0x1b8   : > { %v519_v39 = vpop.permute.xlu1 %518 }
 0x1bc   : > { %v517_v41 = vpop.permute.xlu1 %516 }
 0x274   : > { %v424_v32 = vpop.f32.mrf.mxu0 }
 0x275   : > { %v428_v33 = vsel %vm352_vm1, %v424_v32, -inf }
 0x276   : > { %429 = vmax.xlane.f32.xlu0 %v428_v33  ;;  %v1396_v34 = vpop.f32.mrf.mxu0  ;;  %v1032_v33 = vld [vmem:[%s2060_s3 + $0x20] sm:$0xff] }
 0x277   : > { %v1031_v34 = vld [vmem:[%s2060_s3 + $0x18] sm:$0xff] }
 0x28c   : > { %603 = vrot.lane.b32.xlu0 %v1877_v27, %s1653_s10  ;;  %s1296_s10 = sshll.u32 %s1715_s22, 7 }
 0x290   : > { %681 = vrot.lane.b32.xlu0 %v336_v29, %s1654_s13  ;;  %s242_s13 = scalar_lea.vmem [#allocation5], %s1263_s26 }
 0x2ff   : > { %v430_v35 = vpop.xlane.xlu0 %429 }
 0x300   : > { %v431_v36 = vsub.f32 %v424_v32, %v430_v35  ;;  %v1033_v32 = vld [vmem:[%s2060_s3 + $0x28] sm:$0xff]  ;;  %v1030_v35 = vld [vmem:[%s2060_s3 + $0x10] sm:$0xff] }
 0x302   : > { %v432_v37 = vmul.f32 1.442695, %v431_v36  ;;  %v1029_v36 = vld [vmem:[%s2060_s3 + $0x8] sm:$0xff] }
 0x303   : > { %v604_v38 = vpop.permute.xlu0 %603 }
 0x304   : > { %1534 = vpow2.f32 %v432_v37  ;;  %1408 = vmatpush3.msra.mxu1 %v604_v38  ;;  %v1028_v37 = vld [vmem:[%s2060_s3] sm:$0xff] }
 0x305   : > { %1412 = vmatprep.subr.mxu1 %v1647_v0 }
 0x307   : > { %v682_v52 = vpop.permute.xlu0 %681 }
 0x311   : > { %v1889_v40 = vpop.eup %1534 }
 0x312   : > { %1400 = vmatmul.mubr.msk.f32.vlgmr.msra.gmra.mxu0 %vm352_vm1, %v1889_v40  ;;  %v434_v16 = vsel %vm352_vm1, %v1889_v40, 0.0 }
 0x313   : > { %1403 = vmatpush3.xpose.msk.msra.mxu0 %vm352_vm1, %v519_v39  ;;  %1404 = vmatprep.mubr.msk.f32.mxu0 %vm1648_vm0, %v1647_v0 }
 0x316   : > { %1405 = vmatmul.mubr.msk.f32.vlgmr.msra.gmra.mxu0 %vm352_vm1, %v517_v41 }
 0x3d2   : > { %v1897_v42 = vpop.f32.mrf.mxu0 }
 0x3d4   : > { %v1401_v43 = vpop.f32.mrf.mxu0 }
 0x3d6   : > { %v590_v44 = vpop.f32.mrf.mxu0 }
 0x3d7   : > { %v594_v45 = vsel %vm352_vm1, %v590_v44, -inf }
 0x3d8   : > { %595 = vmax.xlane.f32.xlu1 %v594_v45  ;;  %v1406_v46 = vpop.f32.mrf.mxu0 }
 0x3e9   : > { %683 = vrot.lane.b32.xlu1 %v341_v24, %s1655_s16  ;;  %s1188_s16 = sshll.u32 %s242_s13, 4  ;;  %s1189_s16 = int_to_ptr.vmem [resolvable:$true] %s1188_s16 }
 0x3ed   : > { %768 = vrot.lane.b32.xlu1 %v1877_v27, %s1656_s23 }
 0x3f1   : > { %848 = vrot.lane.b32.xlu1 %v341_v24, %s1657_s25  ;;  %v1041_v24 = vld [vmem:[%s2060_s3 + $0x68] sm:$0xff] }
 0x3f5   : > { %846 = vrot.lane.b32.xlu1 %v336_v29, %s1658_s11  ;;  %v1036_v29 = vld [vmem:[%s2060_s3 + $0x40] sm:$0xff]  ;;  %s2020_s11 = scalar_lea.hbm %s2062_s5, %s1296_s10 }
 0x461   : > { %v596_v47 = vpop.xlane.xlu1 %595 }
 0x462   : > { %v597_v48 = vsub.f32 %v590_v44, %v596_v47 }
 0x464   : > { %v598_v49 = vmul.f32 1.442695, %v597_v48 }
 0x465   : > { %v684_v50 = vpop.permute.xlu1 %683 }
 0x466   : > { %1536 = vpow2.f32 %v598_v49 }
 0x469   : > { %v769_v53 = vpop.permute.xlu1 %768 }
 0x46d   : > { %v849_v62 = vpop.permute.xlu1 %848 }
 0x471   : > { %v847_v2 = vpop.permute.xlu1 %846 }
 0x473   : > { %v1537_v51 = vpop.eup %1536 }
 0x474   : > { %1410 = vmatmul.mubr.msk.f32.vlgmr.msra.gmra.mxu1 %vm352_vm1, %v1537_v51  ;;  %v600_v9 = vsel %vm352_vm1, %v1537_v51, 0.0 }
 0x475   : > { %1413 = vmatpush3.xpose.msk.msra.mxu1 %vm352_vm1, %v684_v50  ;;  %1414 = vmatprep.mubr.msk.f32.mxu1 %vm1648_vm0, %v1647_v0 }
 0x476   : > { %1417 = vmatprep.subr.mxu1 %v1647_v0 }
 0x478   : > { %1415 = vmatmul.mubr.msk.f32.vlgmr.msra.gmra.mxu1 %vm352_vm1, %v682_v52  ;;  %v1277_v52 = vld [vmem:[%s2061_s4] ss:$0 sm:$0xff] }
 0x479   : > { %1418 = vmatpush3.msra.mxu1 %v769_v53  ;;  %1419 = vmatprep.mubr.msk.f32.mxu1 %vm1648_vm0, %v1647_v0 }
 0x47a   : > { %1422 = vmatprep.subr.mxu1 %v1647_v0 }
 0x534   : > { %v675_v54 = vpop.f32.mrf.mxu1 }
 0x536   : > { %v1411_v55 = vpop.f32.mrf.mxu1 }
 0x538   : > { %v755_v56 = vpop.f32.mrf.mxu1 }
 0x539   : > { %v759_v57 = vsel %vm352_vm1, %v755_v56, -inf }
 0x53a   : > { %760 = vmax.xlane.f32.xlu0 %v759_v57  ;;  %v1416_v58 = vpop.f32.mrf.mxu1 }
 0x550   : > { %933 = vrot.lane.b32.xlu0 %v1877_v27, %s1659_s12  ;;  %v1038_v27 = vld [vmem:[%s2060_s3 + $0x50] sm:$0xff]  ;;  %s1175_s12 = scalar_lea.sflag [#allocation4], %s1785_s17 }
 0x5c3   : > { %v761_v59 = vpop.xlane.xlu0 %760 }
 0x5c4   : > { %v762_v60 = vsub.f32 %v755_v56, %v761_v59 }
 0x5c6   : > { %v763_v61 = vmul.f32 1.442695, %v762_v60 }
 0x5c7   : > { %v934_v3 = vpop.permute.xlu0 %933 }
 0x5c8   : > { %1538 = vpow2.f32 %v763_v61 }
 0x5d5   : > { %v1539_v63 = vpop.eup %1538 }
 0x5d6   : > { %1420 = vmatmul.mubr.msk.f32.vlgmr.msra.gmra.mxu1 %vm352_vm1, %v1539_v63  ;;  %v765_v1 = vsel %vm352_vm1, %v1539_v63, 0.0 }
 0x5d7   : > { %1423 = vmatpush3.xpose.msk.msra.mxu1 %vm352_vm1, %v849_v62  ;;  %766 = vadd.xlane.f32.xlu0 %v765_v1 }
 0x5d8   : > { %1424 = vmatprep.mubr.msk.f32.mxu1 %vm1648_vm0, %v1647_v0  ;;  %1427 = vmatprep.subr.mxu1 %v1647_v0 }
 0x5da   : > { %1425 = vmatmul.mubr.msk.f32.vlgmr.msra.gmra.mxu1 %vm352_vm1, %v847_v2 }
 0x5db   : > { %1428 = vmatpush3.msra.mxu1 %v934_v3  ;;  %1429 = vmatprep.mubr.msk.f32.mxu1 %vm1648_vm0, %v1647_v0 }
 0x5dc   : > { %1432 = vmatprep.subr.mxu1 %v1647_v0 }
 0x660   : > { %v767_v17 = vpop.xlane.xlu0 %766 }
 0x696   : > { %v840_v4 = vpop.f32.mrf.mxu1 }
 0x698   : > { %v1421_v5 = vpop.f32.mrf.mxu1 }
 0x69a   : > { %v920_v6 = vpop.f32.mrf.mxu1 }
 0x69b   : > { %v924_v7 = vsel %vm352_vm1, %v920_v6, -inf }
 0x69c   : > { %925 = vmax.xlane.f32.xlu1 %v924_v7  ;;  %v1426_v8 = vpop.f32.mrf.mxu1 }
 0x6a0   : > { %601 = vadd.xlane.f32.xlu1 %v600_v9 }
 0x725   : > { %v926_v10 = vpop.xlane.xlu1 %925 }
 0x726   : > { %v927_v11 = vsub.f32 %v920_v6, %v926_v10 }
 0x728   : > { %v928_v12 = vmul.f32 1.442695, %v927_v11 }
 0x729   : > { %v602_v15 = vpop.xlane.xlu1 %601 }
 0x72a   : > { %1540 = vpow2.f32 %v928_v12 }
 0x72b   : > { %1542 = vrcp.f32 %v602_v15 }
 0x72c   : > { %1544 = vrcp.f32 %v767_v17 }
 0x737   : > { %v1541_v13 = vpop.eup %1540 }
 0x738   : > { %1430 = vmatmul.mubr.msk.f32.vlgmr.msra.gmra.mxu1 %vm352_vm1, %v1541_v13  ;;  %v930_v14 = vsel %vm352_vm1, %v1541_v13, 0.0  ;;  %v1543_v18 = vpop.eup %1542 }
 0x739   : > { %931 = vadd.xlane.f32.xlu1 %v930_v14  ;;  %1464 = vmatprep.mubr.msk.f32.mxu1 %vm1648_vm0, %v1647_v0  ;;  %v680_v19 = vmul.f32 %v1543_v18, %v675_v54  ;;  %v1545_v20 = vpop.eup %1544 }
 0x73a   : > { %v845_v21 = vmul.f32 %v1545_v20, %v840_v4  ;;  %1433 = vmatpush3.xpose.msk.msra.mxu1 %vm1051_vm2, %v1043_v22 }
 0x73b   : > { %1434 = vmatprep.subr.mxu1 %v1647_v0 }
 0x73d   : > { %435 = vadd.xlane.f32.xlu1 %v434_v16 }
 0x73e   : > { %1435 = vmatpush3.xpose.msk.msra.mxu1 %vm1051_vm2, %v1042_v23 }
 0x73f   : > { %1436 = vmatprep.subr.mxu1 %v1647_v0 }
 0x742   : > { %1437 = vmatpush3.xpose.msk.msra.mxu1 %vm1051_vm2, %v1041_v24 }
 0x743   : > { %1438 = vmatprep.subr.mxu1 %v1647_v0 }
 0x746   : > { %1439 = vmatpush3.xpose.msk.msra.mxu1 %vm1051_vm2, %v1040_v25 }
 0x747   : > { %1440 = vmatprep.subr.mxu1 %v1647_v0 }
 0x74a   : > { %1441 = vmatpush3.xpose.msk.msra.mxu1 %vm1051_vm2, %v1039_v26 }
 0x74b   : > { %1442 = vmatprep.subr.mxu1 %v1647_v0 }
 0x74e   : > { %1012 = vrot.lane.b32.xlu1 %v680_v19, %s1660_s28  ;;  %1443 = vmatpush3.xpose.msk.msra.mxu1 %vm1051_vm2, %v1038_v27  ;;  %s1578_s28 = scalar_lea.vmem %s1189_s16, 128 }
 0x74f   : > { %1444 = vmatprep.subr.mxu1 %v1647_v0  ;;  %p1579_p11 = scmp.ne.s32.totalorder %s1189_s16, %s1578_s28 }
 0x751   : > { %p1580_p13 = pnand %p1579_p11, %p2070_p12 }
 0x752   : > { %1016 = vrot.lane.b32.xlu1 %v845_v21, %s1661_s14  ;;  %1445 = vmatpush3.xpose.msk.msra.mxu1 %vm1051_vm2, %v1037_v28  ;;  %s1663_s14 = smov [#allocation5]  }
 0x753   : > { %1446 = vmatprep.subr.mxu1 %v1647_v0  ;;  %p1581_p4 = pneg %p1580_p13  ;;  %s1582_s22 = sshll.u32 %s1663_s14, 4  ;;  %s1583_s22 = int_to_ptr.vmem [resolvable:$false] %s1582_s22 }
 0x754   : > { %s1584_s15 = scalar_lea.vmem %s1583_s22, 256  ;;  %p1585_p5 = scmp.lt.s32.totalorder %s1189_s16, %s1583_s22 }
 0x755   : > { %p1586_p7 = scmp.lt.s32.totalorder %s1584_s15, %s1578_s28 }
 0x756   : > { %1447 = vmatpush3.xpose.msk.msra.mxu1 %vm1051_vm2, %v1036_v29 }
 0x757   : > { %1448 = vmatprep.subr.mxu1 %v1647_v0  ;;  %p1587_p8 = por %p1586_p7, %p1585_p5 }
 0x759   : > { %p1588_p10 = pnand %p1587_p8, %p1581_p4 }
 0x75a   : > { %1449 = vmatpush3.xpose.msk.msra.mxu1 %vm1051_vm2, %v1035_v30 }
 0x75b   : > { %1450 = vmatprep.subr.mxu1 %v1647_v0 }
 0x75e   : > { %1451 = vmatpush3.xpose.msk.msra.mxu1 %vm1051_vm2, %v1034_v31 }
 0x75f   : > { %1452 = vmatprep.subr.mxu1 %v1647_v0 }
 0x762   : > { %1453 = vmatpush3.xpose.msk.msra.mxu1 %vm1051_vm2, %v1033_v32 }
 0x763   : > { %1454 = vmatprep.subr.mxu1 %v1647_v0 }
 0x766   : > { %1455 = vmatpush3.xpose.msk.msra.mxu1 %vm1051_vm2, %v1032_v33 }
 0x767   : > { %1456 = vmatprep.subr.mxu1 %v1647_v0 }
 0x76a   : > { %1457 = vmatpush3.xpose.msk.msra.mxu1 %vm1051_vm2, %v1031_v34 }
 0x76b   : > { %1458 = vmatprep.subr.mxu1 %v1647_v0 }
 0x76e   : > { %1459 = vmatpush3.xpose.msk.msra.mxu1 %vm1051_vm2, %v1030_v35 }
 0x76f   : > { %1460 = vmatprep.subr.mxu1 %v1647_v0 }
 0x772   : > { %1461 = vmatpush3.xpose.msk.msra.mxu1 %vm1051_vm2, %v1029_v36 }
 0x773   : > { %1462 = vmatprep.subr.mxu1 %v1647_v0 }
 0x776   : > { %1463 = vmatpush3.xpose.msk.msra.mxu1 %vm1051_vm2, %v1028_v37 }
 0x7c2   : > { %v932_v38 = vpop.xlane.xlu1 %931 }
 0x7c3   : > { %1546 = vrcp.f32 %v932_v38 }
 0x7c6   : > { %v436_v44 = vpop.xlane.xlu1 %435 }
 0x7c7   : > { %1548 = vrcp.f32 %v436_v44 }
 0x7ca   : > { %v1013_v46 = vpop.permute.xlu1 %1012 }
 0x7ce   : > { %v1017_v48 = vpop.permute.xlu1 %1016 }
 0x7d0   : > { %v1547_v39 = vpop.eup %1546 }
 0x7d4   : > { %v1549_v45 = vpop.eup %1548 }
 0x7d5   : > { %v515_v0 = vmul.f32 %v1549_v45, %v1897_v42 }
 0x7d7   : > { %v1023_v47 = vsel %vm352_vm1, %v515_v0, %v1013_v46 }
 0x7d8   : > { %v1025_v49 = vsel %vm1024_vm3, %v1023_v47, %v1017_v48 }
 0x7f8   : > { %v1005_v40 = vpop.f32.mrf.mxu1 }
 0x7f9   : > { %v1010_v41 = vmul.f32 %v1547_v39, %v1005_v40 }
 0x7fa   : > { %v1431_v43 = vpop.f32.mrf.mxu1 }
 0x7fb   : > { %1020 = vrot.lane.b32.xlu0 %v1010_v41, %s1662_s6 }
 0x86d   : > { %v1021_v50 = vpop.permute.xlu0 %1020 }
 0x86e   : > { %v1027_v51 = vsel %vm1026_vm4, %v1025_v49, %v1021_v50 }
 0x86f   : > { %1465 = vmatmul.mubr.msk.f32.vlgmr.msra.gmra.mxu1 %vm1051_vm2, %v1027_v51 }
 0x92f   : > { %v1169_v42 = vpop.f32.mrf.mxu1 }
 0x930   : > { %v1170_v53 = vadd.f32 %v1277_v52, %v1169_v42 }
 0x931   : > { %v1466_v54 = vpop.f32.mrf.mxu1 }
 0x932   : > { %1173 = vst [vmem:[%s242_s13] sm:$0xff] %v1170_v53 }
 0x933   : > { %1591 = shalt.err (!%p1588_p10)
}
 0x934   : > { %s1592_s7 = scalar_lea.hbm %s2020_s11, 128  ;;  %s1596_s26 = scalar_lea.hbm %s2062_s5, 256 }
 0x935   : > { %p1593_p0 = scmp.ne.s32.totalorder %s2020_s11, %s1592_s7  ;;  %p1597_p1 = scmp.lt.s32.totalorder %s2020_s11, %s2062_s5 }
 0x936   : > { %p1598_p3 = scmp.lt.s32.totalorder %s1596_s26, %s1592_s7 }
 0x937   : > { %p1594_p2 = pnand %p1593_p0, %p2070_p12 }
 0x938   : > { %p1599_p6 = por %p1598_p3, %p1597_p1 }
 0x939   : > { %p1595_p9 = pneg %p1594_p2 }
 0x93b   : > { %p1600_p11 = pnand %p1599_p6, %p1595_p9 }
 0x93d   : > { %1603 = shalt.err (!%p1600_p11)
}
 0x93e   : > { %1472 = dma.vmem_to_hbm [thread:$0]  (%p2070_p12), %s1189_s16, 128, %s2020_s11, %s1175_s12  }
 0x93f PF: > { %s1200_s10 = sand.u32 1, %s1630_s18   ;;  %p2071_p13 = scmp.ne.s32.totalorder %s2067_s30, 0 }
 0x940   : > { %p2072_p4 = scmp.ge.s32.totalorder %s1642_s21, 2  ;;  %s1201_s13 = scalar_lea.sflag [#allocation4], %s1200_s10 }
 0x942   : > { %p1479_p5 = pnand %p2072_p4, %p2071_p13 }
 0x944   : > { %p1480_p7 = pneg %p1479_p5 }
 0x946   : > { %1625 = dma.done.wait (%p1480_p7), %s1201_s13, 128  }
 0x947   : > { %1627 = vsyncadd (%p1480_p7), %s1201_s13, 4294967168  ;;  %p18_p8 = scmp.ge.s32.totalorder %s1719_s24, 4   ;;  %s2073_s18 = smov %s1634_s19 }
 0x948   : > { %s2074_s19 = smov %s1638_s20  ;;  %s2075_s20 = smov %s1731_s27 }
 0x949   : > { %s2076_s21 = smov %s1719_s24  ;;  %20 = sbr.rel (!%p18_p8) target bundleno = 5 (0x5), region = 85 }
 0x94e   :  { %1206 = vsyncpa [#allocation3], 1 }
 0x94f   :  { %1208 = vsyncpa [#allocation3 + $0x1], 1 }
 0x950   :  { %1209 = vsyncpa [#allocation4], 1 }
 0x951   :  { %1211 = vsyncpa [#allocation4 + $0x1], 1 }

</bundles_post_ra>
